<compile_context>
chip_gen: v6e
topology: v6e:2x2x1
jax: 0.10.0
libtpu: 0.0.40
codegen_flags: <defaults>
</compile_context>

<pallas_src>
import functools

import jax
import jax.numpy as jnp
from jax import lax
from jax.experimental import pallas as pl
from jax.experimental.pallas import tpu as pltpu


def _pad8(n):
    return -(-n // 8) * 8


def _pad128(n):
    return -(-n // 128) * 128


# ----------------------------------------------------------------------------- math
def _fold_zero_logsumexp(z):
    """max / exp / sum for log-softmax over [z, 0] with the zero logit folded in."""
    m = jnp.maximum(jnp.max(z, axis=-1, keepdims=True), 0.0)      # (TB, 1)
    p = jnp.exp(z - m)                                            # (TB, K)
    ssum = jnp.sum(p, axis=-1, keepdims=True) + jnp.exp(-m)       # (TB, 1)
    return p, m, ssum


def _ce_loss(z, m, ssum, y, K, exact_parity):
    """-log_softmax(log_softmax([z,0]))[argmax(y)].

    The inner (second) log_softmax is analytically the identity on normalized
    log-probs; it is only evaluated when exact_parity=True (bit-level PyTorch parity).
    """
    TB = z.shape[0]
    K1 = K + 1
    lse = m + jnp.log(ssum)                                       # (TB, 1)

    # argmax(y, -1) = first maximal index (iota/min trick; no gather)
    colsy = lax.broadcasted_iota(jnp.int32, (TB, K1), 1)
    rowmax = jnp.max(y, axis=-1, keepdims=True)
    tgt = jnp.min(jnp.where(y == rowmax, colsy, K1), axis=-1, keepdims=True)  # (TB,1)

    colsk = lax.broadcasted_iota(jnp.int32, (TB, K), 1)
    onehot = (colsk == tgt).astype(jnp.float32)
    z_tgt = jnp.where(tgt == K, 0.0,
                      jnp.sum(z * onehot, axis=-1, keepdims=True))            # (TB,1)

    lse2 = jnp.float32(0.0)
    if exact_parity:
        log_s = z - lse
        log_s_last = -lse
        m2 = jnp.maximum(jnp.max(log_s, axis=-1, keepdims=True), log_s_last)
        s2 = (jnp.sum(jnp.exp(log_s - m2), axis=-1, keepdims=True)
              + jnp.exp(log_s_last - m2))
        lse2 = m2 + jnp.log(s2)

    # loss = -log_s2[tgt] = lse + lse2 - z_aug[tgt]
    return (lse + lse2) - z_tgt


# --------------------------------------------------------------------------- kernels
def _kl_breg_kernel(x_ref, xrows_ref, y_ref, loss_ref, grad_ref, hess_ref,
                    *, w, K, TR, exact_parity):
    r = pl.program_id(1)                                          # hess row-tile index
    x = x_ref[...].astype(jnp.float32)                            # (TB, K)
    z = w * x
    p, m, ssum = _fold_zero_logsumexp(z)
    s = p * (1.0 / ssum)            # softmax([z,0])[:K]; reuses exp(z-m), one divide
    ws = w * s                      # fold w once at (TB,K) size

    @pl.when(r == 0)
    def _():
        y = y_ref[...].astype(jnp.float32)                        # (TB, K+1)
        loss_ref[...] = _ce_loss(z, m, ssum, y, K, exact_parity).astype(loss_ref.dtype)
        # grad = w * (softmax([z,0]) - y)[..., :-1]
        grad_ref[...] = (w * (s - y[:, :K])).astype(grad_ref.dtype)

    # Hessian row tile r:  hess[b, i, j] = ws_i * (w*delta_ij - ws_j),
    # global rows i in [r*TR, (r+1)*TR).  w^2 folded into (TB,K)-sized operands ->
    # one subtract + one multiply on the (TB, TR, K) slab.
    if TR == K:
        ws_rows = ws
        row_base = 0
    else:
        # Row slice arrives via its own BlockSpec view (no dynamic lane slicing);
        # one extra (TB, TR) exp re-derives the sliced softmax.
        zr = w * xrows_ref[...].astype(jnp.float32)               # (TB, TR)
        lse = m + jnp.log(ssum)
        ws_rows = w * jnp.exp(zr - lse)
        row_base = r * TR
    ri = lax.broadcasted_iota(jnp.int32, (TR, K), 0)
    ci = lax.broadcasted_iota(jnp.int32, (TR, K), 1)
    w_eye = jnp.where(ci == ri + row_base, jnp.float32(w), jnp.float32(0.0))  # (TR, K)
    hess = ws_rows[:, :, None] * (w_eye[None, :, :] - ws[:, None, :])
    hess_ref[...] = hess.astype(hess_ref.dtype)


def _kl_breg_loss_kernel(x_ref, y_ref, loss_ref, *, w, K, exact_parity):
    x = x_ref[...].astype(jnp.float32)
    z = w * x
    _, m, ssum = _fold_zero_logsumexp(z)
    y = y_ref[...].astype(jnp.float32)
    loss_ref[...] = _ce_loss(z, m, ssum, y, K, exact_parity).astype(loss_ref.dtype)


# ---------------------------------------------------------------------------- sizing
def _vmem_budgets():
    """(double-buffered hess-tile cap, vmem_limit_bytes clamp) per TPU generation."""
    try:
        cap = int(getattr(pltpu.get_tpu_info(), "vmem_capacity_bytes", 0) or 0)
    except Exception:
        cap = 0
    if cap >= 100 * 1024 * 1024:           # v5e / v6e: 128 MiB physical VMEM per core
        return 32 * 1024 * 1024, 72 * 1024 * 1024
    # v7x (64 MiB physical, 32 MiB scoped default) or unknown: stay conservative
    return 12 * 1024 * 1024, 32 * 1024 * 1024


def _row_tile_candidates(K):
    """Legal hess row tiles: K itself, or 128-multiple divisors of K (the (TB,TR)
    x-row view puts TR on the lane dim, so TR must be 128-aligned unless == K)."""
    cands = {K}
    if K % 128 == 0:
        cands.update(d for d in range(128, K, 128) if K % d == 0)
    return sorted(cands, reverse=True)


def _pick_tiles(B, K, hess_cap_bytes, out_isize):
    """Choose (TB, TR) so the padded double-buffered hess tile + live f32 temporaries
    stay under hess_cap_bytes, preferring >=2 batch grid steps whenever B allows."""
    Kl = _pad128(K)
    per_elem = 2 * out_isize + 2 * 4       # dbuf out tile + ~2 live f32 temporaries

    def fits(tb, tr):
        return tb * _pad8(tr) * Kl * per_elem <= hess_cap_bytes

    B_pad = B if B < 8 else _pad8(B)
    min_tb = B_pad if B_pad < 8 else 8

    tr_cands = _row_tile_candidates(K)
    TR = tr_cands[-1]                      # best-effort fallback (smallest legal tile)
    for tr in tr_cands:
        if fits(min_tb, tr):
            TR = tr
            break

    if B_pad <= 8:
        return B_pad, TR

    divisors = [t for t in range(8, B_pad + 1, 8) if B_pad % t == 0]
    fitting = [t for t in divisors if fits(t, TR)] or [8]
    TB = max(fitting)
    if B_pad // TB < 2 and B_pad >= 16:
        two_step = [t for t in fitting if B_pad // t >= 2]
        if two_step:                       # keep >=2 steps: megacore + DMA overlap
            TB = max(two_step)
    return TB, TR


def _pick_tb_loss_only(B, K, x_isize, y_isize):
    if B <= 8:
        return B
    B_pad = _pad8(B)
    per_row = (_pad128(K) * (2 * x_isize + 6 * 4)
               + _pad128(K + 1) * (2 * y_isize + 4) + 2 * 128 * 4)
    cap = 4 * 1024 * 1024
    divisors = [t for t in range(8, B_pad + 1, 8) if B_pad % t == 0]
    fitting = [t for t in divisors if t * per_row <= cap] or [8]
    tb = max(fitting)
    if B_pad // tb < 2 and B_pad >= 16:
        two = [t for t in fitting if B_pad // t >= 2]
        if two:
            tb = max(two)
    return tb


def _estimate_vmem_bytes(TB, TR, K, x_isize, y_isize, out_isize):
    """Padded-layout VMEM estimate: double-buffered tiles + live f32 temporaries."""
    TBp, Kl, K1l = _pad8(TB), _pad128(K), _pad128(K + 1)
    TRp, TRl = _pad8(TR), _pad128(TR)
    dbuf = 2 * (TBp * Kl * x_isize             # x (full class dim) tile
                + TBp * TRl * x_isize          # x row-view tile
                + TBp * K1l * y_isize          # y tile
                + TBp * 128 * 4                # loss tile (f32, lane-padded)
                + TBp * Kl * out_isize         # grad tile
                + TB * TRp * Kl * out_isize)   # hess tile
    live = 3 * TB * TRp * Kl * 4 + 8 * TBp * Kl * 4   # f32 intermediates (upper bound)
    return dbuf + live


# --------------------------------------------------------------------------- wrapper
def kl_div_bregman(x, y, w=1.0, grad_clip=1000.0, only_loss=False,
                   block_b=None, block_r=None, exact_parity=False, out_dtype=None):
    """Pallas TPU implementation of KLDivBregman.forward.

    Returns (loss[f32,(B,)], grad[out_dtype,(B,K)], hess[out_dtype,(B,K,K)]).
    out_dtype defaults to promote_types(x, y); pass jnp.bfloat16 to halve the
    Hessian writeback bytes (all in-kernel math stays f32).
    """
    del grad_clip  # unused by the reference forward pass (kept for API parity)
    B, K = x.shape
    K1 = K + 1
    assert y.shape == (B, K1), f"y must be (B, K+1); got {y.shape}"

    if out_dtype is None:
        out_dtype = jnp.promote_types(x.dtype, y.dtype)
    x_isize = jnp.dtype(x.dtype).itemsize
    y_isize = jnp.dtype(y.dtype).itemsize
    out_isize = jnp.dtype(out_dtype).itemsize
    hess_cap, vmem_clamp = _vmem_budgets()

    # ---------------- loss-only fast path: no Hessian compute / writeback ----------
    if only_loss:
        TB = int(block_b) if block_b is not None else _pick_tb_loss_only(B, K, x_isize, y_isize)
        B_pad = -(-B // TB) * TB
        if B_pad != B:
            x = jnp.concatenate([x, jnp.zeros((B_pad - B, K), x.dtype)], axis=0)
            y = jnp.concatenate([y, jnp.zeros((B_pad - B, K1), y.dtype)], axis=0)
        est = (2 * _pad8(TB) * (_pad128(K) * x_isize + _pad128(K1) * y_isize + 128 * 4)
               + 8 * _pad8(TB) * _pad128(K) * 4)
        vmem_limit = int(min(max(4 * est, 16 * 1024 * 1024), vmem_clamp))
        kernel = functools.partial(_kl_breg_loss_kernel, w=float(w), K=K,
                                   exact_parity=bool(exact_parity))
        loss = pl.pallas_call(
            kernel,
            out_shape=jax.ShapeDtypeStruct((B_pad, 1), jnp.float32),
            grid_spec=pltpu.PrefetchScalarGridSpec(
                num_scalar_prefetch=0,
                grid=(B_pad // TB,),
                in_specs=[pl.BlockSpec((TB, K), lambda i: (i, 0)),
                          pl.BlockSpec((TB, K1), lambda i: (i, 0))],
                out_specs=pl.BlockSpec((TB, 1), lambda i: (i, 0))),
            compiler_params=pltpu.CompilerParams(
                dimension_semantics=("parallel",),
                vmem_limit_bytes=vmem_limit),
        )(x, y)
        return loss[:B, 0]

    # ---------------- full path: loss + grad + hess ---------------------------------
    TB, TR = _pick_tiles(B, K, hess_cap, out_isize)
    if block_b is not None:
        TB = int(block_b)
    if block_r is not None:
        TR = int(block_r)
    assert K % TR == 0, f"block_r={TR} must divide K={K}"
    B_pad = -(-B // TB) * TB
    n_b, n_r = B_pad // TB, K // TR

    if B_pad != B:     # pad awkward batch sizes so every tile is full; sliced off below
        x = jnp.concatenate([x, jnp.zeros((B_pad - B, K), x.dtype)], axis=0)
        y = jnp.concatenate([y, jnp.zeros((B_pad - B, K1), y.dtype)], axis=0)

    est = _estimate_vmem_bytes(TB, TR, K, x_isize, y_isize, out_isize)
    vmem_limit = int(min(max(int(est * 1.25), 16 * 1024 * 1024), vmem_clamp))

    kernel = functools.partial(_kl_breg_kernel, w=float(w), K=K, TR=TR,
                               exact_parity=bool(exact_parity))
    loss, grad, hess = pl.pallas_call(
        kernel,
        out_shape=(
            jax.ShapeDtypeStruct((B_pad, 1), jnp.float32),
            jax.ShapeDtypeStruct((B_pad, K), out_dtype),
            jax.ShapeDtypeStruct((B_pad, K, K), out_dtype),
        ),
        grid_spec=pltpu.PrefetchScalarGridSpec(
            num_scalar_prefetch=0,
            grid=(n_b, n_r),
            in_specs=[
                pl.BlockSpec((TB, K), lambda i, r: (i, 0)),     # x, full class dim
                pl.BlockSpec((TB, TR), lambda i, r: (i, r)),    # x, hess row-tile view
                pl.BlockSpec((TB, K1), lambda i, r: (i, 0)),    # y
            ],
            out_specs=[
                pl.BlockSpec((TB, 1), lambda i, r: (i, 0)),
                pl.BlockSpec((TB, K), lambda i, r: (i, 0)),
                pl.BlockSpec((TB, TR, K), lambda i, r: (i, r, 0)),
            ],
        ),
        compiler_params=pltpu.CompilerParams(
            dimension_semantics=("parallel", "arbitrary"),      # batch || , hess rows seq
            vmem_limit_bytes=vmem_limit),
    )(x, x, y)

    loss = loss[:B, 0]
    if B_pad != B:
        grad = grad[:B]
        hess = hess[:B]
    return loss, grad, hess


# -------------------------------------------------------------------------- reference
def _ref_kl_div_bregman(x, y, w=1.0):
    """Pure-JAX reference mirroring the PyTorch forward, for verification."""
    z = w * x.astype(jnp.float32)
    z = jnp.concatenate([z, jnp.zeros_like(z[..., :1])], axis=-1)
    log_s = jax.nn.log_softmax(z, axis=-1)
    log_s2 = jax.nn.log_softmax(log_s, axis=-1)      # F.cross_entropy's internal one
    t = jnp.argmax(y, axis=-1)
    loss = -jnp.take_along_axis(log_s2, t[..., None], axis=-1)[..., 0]
    s = jnp.exp(log_s)
    grad = w * (s - y.astype(jnp.float32))[..., :-1]
    outer = jnp.exp(log_s[..., :, None] + log_s[..., None, :])
    diag = s[..., None] * jnp.eye(s.shape[-1], dtype=s.dtype)
    hess = (w ** 2) * (diag - outer)[..., :-1, :-1]
    return loss, grad, hess


if __name__ == "__main__":
    key = jax.random.PRNGKey(0)
    kx, ky = jax.random.split(key)

    B, K = 16, 8                      # x: (B, K) logits, y: (B, K+1) probs
    w = 1.5

    x = jax.random.normal(kx, (B, K), dtype=jnp.float32)
    y = jax.nn.softmax(jax.random.normal(ky, (B, K + 1), dtype=jnp.float32), axis=-1)

    rl, rg, rh = _ref_kl_div_bregman(x, y, w=w)

    # default auto-tiled path
    loss, grad, hess = kl_div_bregman(x, y, w=w)
    jax.block_until_ready((loss, grad, hess))
    assert loss.shape == (B,) and grad.shape == (B, K) and hess.shape == (B, K, K)
    assert jnp.allclose(loss, rl, atol=1e-5, rtol=1e-5)
    assert jnp.allclose(grad, rg, atol=1e-5, rtol=1e-5)
    assert jnp.allclose(hess, rh, atol=1e-5, rtol=1e-5)

    # forced 2-step batch grid + exact-parity second log_softmax
    loss2, grad2, hess2 = kl_div_bregman(x, y, w=w, block_b=8, exact_parity=True)
    jax.block_until_ready((loss2, grad2, hess2))
    assert jnp.allclose(loss2, rl, atol=1e-5, rtol=1e-5)
    assert jnp.allclose(grad2, rg, atol=1e-5, rtol=1e-5)
    assert jnp.allclose(hess2, rh, atol=1e-5, rtol=1e-5)

    # loss-only fast path (no Hessian compute/writeback)
    l_only = kl_div_bregman(x, y, w=w, only_loss=True)
    jax.block_until_ready(l_only)
    assert jnp.allclose(l_only, rl, atol=1e-5, rtol=1e-5)

    # awkward (non-multiple-of-8) batch exercises the pad/slice path
    l3, g3, h3 = kl_div_bregman(x[:13], y[:13], w=w)
    jax.block_until_ready((l3, g3, h3))
    assert jnp.allclose(l3, rl[:13], atol=1e-5, rtol=1e-5)
    assert jnp.allclose(g3, rg[:13], atol=1e-5, rtol=1e-5)
    assert jnp.allclose(h3, rh[:13], atol=1e-5, rtol=1e-5)

    print("KERNEL_OK")
</pallas_src>

<mosaic_0001>
module attributes {stable_mosaic.version = 11 : i64} {
  func.func @_kl_breg_kernel(%arg0: i32, %arg1: i32, %arg2: memref<8x8xf32, #tpu.memory_space<vmem>>, %arg3: memref<8x8xf32, #tpu.memory_space<vmem>>, %arg4: memref<8x9xf32, #tpu.memory_space<vmem>>, %arg5: memref<8x1xf32, #tpu.memory_space<vmem>>, %arg6: memref<8x8xf32, #tpu.memory_space<vmem>>, %arg7: memref<8x8x8xf32, #tpu.memory_space<vmem>>) attributes {dimension_semantics = [#tpu.dimension_semantics<parallel>, #tpu.dimension_semantics<arbitrary>], iteration_bounds = array<i64: 2, 1>, scalar_prefetch = 0 : i64, scratch_operands = 0 : i64, tpu.core_type = #tpu.core_type<tc>, window_params = [{transform_indices = @transform_0, window_bounds = array<i64: 8, 8>}, {transform_indices = @transform_1, window_bounds = array<i64: 8, 8>}, {transform_indices = @transform_2, window_bounds = array<i64: 8, 9>}, {transform_indices = @transform_3, window_bounds = array<i64: 8, 1>}, {transform_indices = @transform_4, window_bounds = array<i64: 8, 8>}, {transform_indices = @transform_5, window_bounds = array<i64: 8, 8, 8>}]} {
    %c0 = arith.constant 0 : index
    %c0_0 = arith.constant 0 : index
    %0 = vector.load %arg2[%c0, %c0_0] : memref<8x8xf32, #tpu.memory_space<vmem>>, vector<8x8xf32>
    %cst = arith.constant 1.500000e+00 : f32
    %1 = vector.broadcast %cst : f32 to vector<8x8xf32>
    %2 = arith.mulf %1, %0 : vector<8x8xf32>
    %cst_1 = arith.constant dense<0xFF800000> : vector<8xf32>
    %3 = vector.multi_reduction <maximumf>, %2, %cst_1 [1] : vector<8x8xf32> to vector<8xf32>
    %4 = vector.shape_cast %3 : vector<8xf32> to vector<8x1xf32>
    %cst_2 = arith.constant 0.000000e+00 : f32
    %5 = vector.broadcast %cst_2 : f32 to vector<8x1xf32>
    %6 = arith.maximumf %4, %5 : vector<8x1xf32>
    %7 = vector.broadcast %6 : vector<8x1xf32> to vector<8x8xf32>
    %8 = arith.subf %2, %7 : vector<8x8xf32>
    %9 = math.exp %8 : vector<8x8xf32>
    %cst_3 = arith.constant dense<0.000000e+00> : vector<8xf32>
    %10 = vector.multi_reduction <add>, %9, %cst_3 [1] : vector<8x8xf32> to vector<8xf32>
    %11 = vector.shape_cast %10 : vector<8xf32> to vector<8x1xf32>
    %cst_4 = arith.constant 0.000000e+00 : f32
    %12 = vector.broadcast %cst_4 : f32 to vector<8x1xf32>
    %13 = arith.subf %12, %6 : vector<8x1xf32>
    %14 = math.exp %13 : vector<8x1xf32>
    %15 = arith.addf %11, %14 : vector<8x1xf32>
    %cst_5 = arith.constant 1.000000e+00 : f32
    %16 = vector.broadcast %cst_5 : f32 to vector<8x1xf32>
    %17 = arith.divf %16, %15 : vector<8x1xf32>
    %18 = vector.broadcast %17 : vector<8x1xf32> to vector<8x8xf32>
    %19 = arith.mulf %9, %18 : vector<8x8xf32>
    %cst_6 = arith.constant 1.500000e+00 : f32
    %20 = vector.broadcast %cst_6 : f32 to vector<8x8xf32>
    %21 = arith.mulf %20, %19 : vector<8x8xf32>
    %c0_i32 = arith.constant 0 : i32
    %22 = arith.cmpi eq, %arg1, %c0_i32 : i32
    %23 = arith.extui %22 : i1 to i32
    %c0_i32_7 = arith.constant 0 : i32
    %24 = arith.cmpi ne, %23, %c0_i32_7 : i32
    scf.if %24 {
      %c0_14 = arith.constant 0 : index
      %c0_15 = arith.constant 0 : index
      %42 = vector.load %arg4[%c0_14, %c0_15] : memref<8x9xf32, #tpu.memory_space<vmem>>, vector<8x9xf32>
      %43 = math.log %15 : vector<8x1xf32>
      %44 = arith.addf %6, %43 : vector<8x1xf32>
      %45 = tpu.iota {dimensions = array<i32: 1>} : vector<8x9xi32>
      %cst_16 = arith.constant dense<0xFF800000> : vector<8xf32>
      %46 = vector.multi_reduction <maximumf>, %42, %cst_16 [1] : vector<8x9xf32> to vector<8xf32>
      %47 = vector.shape_cast %46 : vector<8xf32> to vector<8x1xf32>
      %48 = vector.broadcast %47 : vector<8x1xf32> to vector<8x9xf32>
      %49 = arith.cmpf oeq, %42, %48 : vector<8x9xf32>
      %c9_i32 = arith.constant 9 : i32
      %50 = vector.broadcast %c9_i32 : i32 to vector<8x9xi32>
      %51 = arith.select %49, %45, %50 : vector<8x9xi1>, vector<8x9xi32>
      %cst_17 = arith.constant dense<2147483647> : vector<8xi32>
      %52 = vector.multi_reduction <minsi>, %51, %cst_17 [1] : vector<8x9xi32> to vector<8xi32>
      %53 = vector.shape_cast %52 : vector<8xi32> to vector<8x1xi32>
      %54 = tpu.iota {dimensions = array<i32: 1>} : vector<8x8xi32>
      %55 = vector.broadcast %53 : vector<8x1xi32> to vector<8x8xi32>
      %56 = arith.cmpi eq, %54, %55 : vector<8x8xi32>
      %57 = arith.extui %56 : vector<8x8xi1> to vector<8x8xi32>
      %58 = arith.sitofp %57 : vector<8x8xi32> to vector<8x8xf32>
      %c8_i32 = arith.constant 8 : i32
      %59 = vector.broadcast %c8_i32 : i32 to vector<8x1xi32>
      %60 = arith.cmpi eq, %53, %59 : vector<8x1xi32>
      %61 = arith.mulf %2, %58 : vector<8x8xf32>
      %cst_18 = arith.constant dense<0.000000e+00> : vector<8xf32>
      %62 = vector.multi_reduction <add>, %61, %cst_18 [1] : vector<8x8xf32> to vector<8xf32>
      %63 = vector.shape_cast %62 : vector<8xf32> to vector<8x1xf32>
      %cst_19 = arith.constant 0.000000e+00 : f32
      %64 = vector.broadcast %cst_19 : f32 to vector<8x1xf32>
      %65 = arith.select %60, %64, %63 : vector<8x1xi1>, vector<8x1xf32>
      %cst_20 = arith.constant 0.000000e+00 : f32
      %66 = vector.broadcast %cst_20 : f32 to vector<8x1xf32>
      %67 = arith.addf %44, %66 : vector<8x1xf32>
      %68 = arith.subf %67, %65 : vector<8x1xf32>
      %c0_21 = arith.constant 0 : index
      %c0_22 = arith.constant 0 : index
      %69 = vector.load %arg5[%c0_21, %c0_22] : memref<8x1xf32, #tpu.memory_space<vmem>>, vector<8x1xf32>
      tpu.vector_store %arg5[%c0_21, %c0_22], %68 {strides = array<i32>} : memref<8x1xf32, #tpu.memory_space<vmem>>, vector<8x1xf32>,
      %70 = vector.extract_strided_slice %42 {offsets = [0, 0], sizes = [8, 8], strides = [1, 1]} : vector<8x9xf32> to vector<8x8xf32>
      %71 = arith.subf %19, %70 : vector<8x8xf32>
      %cst_23 = arith.constant 1.500000e+00 : f32
      %72 = vector.broadcast %cst_23 : f32 to vector<8x8xf32>
      %73 = arith.mulf %72, %71 : vector<8x8xf32>
      %c0_24 = arith.constant 0 : index
      %c0_25 = arith.constant 0 : index
      %74 = vector.load %arg6[%c0_24, %c0_25] : memref<8x8xf32, #tpu.memory_space<vmem>>, vector<8x8xf32>
      tpu.vector_store %arg6[%c0_24, %c0_25], %73 {strides = array<i32>} : memref<8x8xf32, #tpu.memory_space<vmem>>, vector<8x8xf32>,
    } else {
    }
    %25 = tpu.iota {dimensions = array<i32: 0>} : vector<8x8xi32>
    %26 = tpu.iota {dimensions = array<i32: 1>} : vector<8x8xi32>
    %c0_i32_8 = arith.constant 0 : i32
    %27 = vector.broadcast %c0_i32_8 : i32 to vector<8x8xi32>
    %28 = arith.addi %25, %27 : vector<8x8xi32>
    %29 = arith.cmpi eq, %26, %28 : vector<8x8xi32>
    %cst_9 = arith.constant 1.500000e+00 : f32
    %cst_10 = arith.constant 0.000000e+00 : f32
    %30 = vector.broadcast %cst_9 : f32 to vector<8x8xf32>
    %31 = vector.broadcast %cst_10 : f32 to vector<8x8xf32>
    %32 = arith.select %29, %30, %31 : vector<8x8xi1>, vector<8x8xf32>
    %33 = vector.shape_cast %21 : vector<8x8xf32> to vector<8x8x1xf32>
    %34 = vector.shape_cast %32 : vector<8x8xf32> to vector<1x8x8xf32>
    %35 = vector.shape_cast %21 : vector<8x8xf32> to vector<8x1x8xf32>
    %36 = vector.broadcast %34 : vector<1x8x8xf32> to vector<8x8x8xf32>
    %37 = vector.broadcast %35 : vector<8x1x8xf32> to vector<8x8x8xf32>
    %38 = arith.subf %36, %37 : vector<8x8x8xf32>
    %39 = vector.broadcast %33 : vector<8x8x1xf32> to vector<8x8x8xf32>
    %40 = arith.mulf %39, %38 : vector<8x8x8xf32>
    %c0_11 = arith.constant 0 : index
    %c0_12 = arith.constant 0 : index
    %c0_13 = arith.constant 0 : index
    %41 = vector.load %arg7[%c0_11, %c0_12, %c0_13] : memref<8x8x8xf32, #tpu.memory_space<vmem>>, vector<8x8x8xf32>
    tpu.vector_store %arg7[%c0_11, %c0_12, %c0_13], %40 {strides = array<i32>} : memref<8x8x8xf32, #tpu.memory_space<vmem>>, vector<8x8x8xf32>,
    return
  }
  func.func @transform_0(%arg0: i32, %arg1: i32) -> (i32, i32) {
    %c0_i32 = arith.constant 0 : i32
    %c0_i32_0 = arith.constant 0 : i32
    return %arg0, %c0_i32 : i32, i32
  }
  func.func @transform_1(%arg0: i32, %arg1: i32) -> (i32, i32) {
    %c0_i32 = arith.constant 0 : i32
    return %arg0, %arg1 : i32, i32
  }
  func.func @transform_2(%arg0: i32, %arg1: i32) -> (i32, i32) {
    %c0_i32 = arith.constant 0 : i32
    %c0_i32_0 = arith.constant 0 : i32
    return %arg0, %c0_i32 : i32, i32
  }
  func.func @transform_3(%arg0: i32, %arg1: i32) -> (i32, i32) {
    %c0_i32 = arith.constant 0 : i32
    %c0_i32_0 = arith.constant 0 : i32
    return %arg0, %c0_i32 : i32, i32
  }
  func.func @transform_4(%arg0: i32, %arg1: i32) -> (i32, i32) {
    %c0_i32 = arith.constant 0 : i32
    %c0_i32_0 = arith.constant 0 : i32
    return %arg0, %c0_i32 : i32, i32
  }
  func.func @transform_5(%arg0: i32, %arg1: i32) -> (i32, i32, i32) {
    %c0_i32 = arith.constant 0 : i32
    %c0_i32_0 = arith.constant 0 : i32
    return %arg0, %arg1, %c0_i32 : i32, i32, i32
  }
}

</mosaic_0001>

<bundles_post_ra>
// kernel: tpu_custom_call.1
= control target key start
LH: loop header
LB: loop body
LE: loop exit
PB: predicated region body
PF: predicated region fallthrough
CT: control target
= control target key end

     0   :  { %s821_s18 = smov 0   ;;  %s823_s19 = smov 0   ;;  %s934_s0 = inlined_call_operand.vmem [shape: f32[16,8], index: 0, kind: input, shape index: {}]   ;;  %s935_s1 = inlined_call_operand.vmem [shape: f32[16,8], index: 1, kind: input, shape index: {}]   ;;  %s936_s2 = inlined_call_operand.vmem [shape: f32[16,9], index: 2, kind: input, shape index: {}]   ;;  %s937_s3 = inlined_call_operand.vmem [shape: f32[16,1], index: 3, kind: output, shape index: {0}]   ;;  %s938_s4 = inlined_call_operand.vmem [shape: f32[16,8], index: 4, kind: output, shape index: {1}]   ;;  %s939_s5 = inlined_call_operand.vmem [shape: f32[16,8,8], index: 5, kind: output, shape index: {2}]  }
   0x1   :  { %s825_s20 = smov 0  }
   0x2 LB: > { %s28_s1 = sadd.s32 1, %s783_s19  ;;  %p721_p0 = scmp.ge.s32.totalorder %s787_s20, 1  ;;  %s787_s20 = sphi %s825_s20, %s16_s20   ;;  %s783_s19 = sphi %s823_s19, %s941_s19   ;;  %s779_s18 = sphi %s821_s18, %s940_s18  }
   0x3   : > { %p30_p1 = scmp.ge.s32.totalorder %s28_s1, 2  ;;  %p228_p2 = scmp.lt.s32.totalorder %s787_s20, 3 }
   0x5   : > { %s943_s1 = smov (%p30_p1, %s28_s1), 0  ;;  %p229_p3 = pnand %p721_p0, %p228_p2 }
   0x6   : > { %p277_p4 = scmp.lt.s32.totalorder (!%p229_p3), %s779_s18, 1  ;;  %s726_s7 = sshll.u32 (!%p229_p3), %s779_s18, 3 }
   0x7   : > { %232 = sbr.rel (%p229_p3) target bundleno = 595 (0x253), region = 32  ;;  %p301_p5 = scmp.lt.s32.totalorder (!%p229_p3), %s726_s7, 15 }
   0xc   : > { %s278_s21 = scalar_select %p277_p4, %s779_s18, 1  ;;  %vm340_vm0 = vcmask 72704   ;;  %vm311_vm1 = vcmask 64512   ;;  %v338_v5 = vlaneseq  ;;  %v789_v27 = vmov 1966171168  }
   0xd   : > { %v442_v28 = vunpack.c.l.s4 %v789_v27  ;;  %v790_v54 = vmov 0.0   ;;  %s945_s7 = smov (!%p301_p5, %s726_s7), 15  ;;  %vm372_vm7 = vcmask 7168  }
   0xe   : > { %s843_s22 = sshll.u32 %s278_s21, 3  ;;  %v858_v6 = vand.u32 127, %v338_v5  ;;  %v378_v29 = vshrl.u32 %v338_v5, 7  ;;  %s727_s8 = sshll.u32 %s945_s7, 3 }
   0xf   : > { %s291_s25 = scalar_lea.vmem %s936_s2, %s843_s22  ;;  %s280_s28 = scalar_lea.vmem %s934_s0, %s843_s22  ;;  %v443_v30 = vunpack.c.0.s8 %v442_v28 }
  0x10   : > { %v334_v0 = vld [vmem:[%s291_s25] sm:$0xff]  ;;  %v392_v33 = vsub.s32 1, %v378_v29  ;;  %v385_v34 = vsub.s32 0, %v378_v29  ;;  %v434_v38 = vsub.s32 7, %v378_v29  ;;  %s299_s6 = scalar_lea.vmem %s938_s4, %s843_s22  ;;  %v399_v39 = vsub.s32 2, %v378_v29  ;;  %s900_s11 = scalar_lea.vmem %s939_s5, %s727_s8 }
  0x11   : > { %v341_v1 = vsel %vm340_vm0, %v334_v0, -inf  ;;  %v309_v2 = vld [vmem:[%s280_s28] sm:$0xff]  ;;  %v446_v37 = vsub.s32 %v443_v30, %v378_v29  ;;  %v413_v43 = vsub.s32 4, %v378_v29  ;;  %vm381_vm4 = vcmp.eq.s32.totalorder %v858_v6, %v378_v29  ;;  %s295_s14 = scalar_lea.vmem %s937_s3, %s843_s22 }
  0x12   : > { %342 = vmax.xlane.f32.xlu0 %v341_v1  ;;  %v854_v3 = vmul.f32 1.5, %v309_v2  ;;  %v406_v48 = vsub.s32 3, %v378_v29  ;;  %v427_v49 = vsub.s32 6, %v378_v29  ;;  %v882_v55 = vsel %vm381_vm4, 1.5, %v790_v54 }
  0x13   : > { %v420_v56 = vsub.s32 5, %v378_v29 }
  0x14   : > { %v312_v4 = vsel %vm311_vm1, %v854_v3, -inf }
  0x16   : > { %313 = vmax.xlane.f32.xlu0 %v312_v4 }
  0x9b   : > { %v343_v7 = vpop.xlane.xlu0 %342 }
  0x9c   : > { %vm344_vm2 = vcmp.eq.f32.partialorder %v334_v0, %v343_v7 }
  0x9d   : > { %v345_v8 = vsel %vm344_vm2, %v858_v6, 9 }
  0x9e   : > { %v346_v9 = vsel %vm340_vm0, %v345_v8, 2147483647 }
  0x9f   : > { %v314_v10 = vpop.xlane.xlu0 %313  ;;  %v348_v11 = vshra.s32 %v346_v9, 16  ;;  %v347_v18 = vand.u32 65535, %v346_v9 }
  0xa0   : > { %v862_v12 = vmax.f32 %v314_v10, 0.0 }
  0xa1   : > { %v350_v13 = vcvt.s32.f32 %v348_v11  ;;  %v349_v21 = vcvt.s32.f32 %v347_v18 }
  0xa2   : > { %v316_v14 = vsub.f32 %v854_v3, %v862_v12  ;;  %v322_v19 = vsub.f32 0.0, %v862_v12 }
  0xa3   : > { %351 = vmin.xlane.f32.xlu1 %v350_v13 }
  0xa4   : > { %v317_v15 = vmul.f32 1.442695, %v316_v14  ;;  %v323_v22 = vmul.f32 1.442695, %v322_v19 }
  0xa6   : > { %757 = vpow2.f32 %v317_v15 }
  0xa7   : > { %759 = vpow2.f32 %v323_v22 }
  0xb3   : > { %v758_v16 = vpop.eup %757 }
  0xb4   : > { %v319_v17 = vsel %vm311_vm1, %v758_v16, 0.0  ;;  %v760_v24 = vpop.eup %759 }
  0xb5   : > { %320 = vadd.xlane.f32.xlu1 %v319_v17 }
 0x12c   : > { %v868_v20 = vpop.xlane.xlu1 %351 }
 0x12d   : > { %vm353_vm3 = vcmp.eq.f32.partialorder %v350_v13, %v868_v20 }
 0x12e   : > { %v354_v23 = vsel %vm353_vm3, %v349_v21, inf }
 0x12f   : > { %355 = vmin.xlane.f32.xlu0 %v354_v23 }
 0x13e   : > { %v321_v25 = vpop.xlane.xlu1 %320 }
 0x13f   : > { %v871_v26 = vadd.f32 %v760_v24, %v321_v25  ;;  %v358_v24 = vcvt.f32.s32 %v868_v20 }
 0x141   : > { %761 = vrcp.f32 %v871_v26  ;;  %v359_v27 = vshll.u32 %v358_v24, 16 }
 0x142   : > { %763 = vlog2.f32 %v871_v26 }
 0x14e   : > { %v762_v31 = vpop.eup %761 }
 0x14f   : > { %v328_v32 = vmul.f32 %v762_v31, %v758_v16 }
 0x151   : > { %v329_v35 = vmul.f32 1.5, %v328_v32  ;;  %v374_v36 = vsub.f32 %v328_v32, %v334_v0 }
 0x153   : > { %v375_v40 = vmul.f32 1.5, %v374_v36  ;;  %v393_v41 = vrot.slane %v329_v35, %v392_v33  ;;  %v386_v42 = vrot.slane %v329_v35, %v385_v34  ;;  %v447_v44 = vrot.slane %v329_v35, %v446_v37 }
 0x154   : > { %v440_v45 = vcombine.high %v329_v35, %v329_v35  ;;  %v880_v46 = vrot.slane %v329_v35, %v434_v38  ;;  %v400_v47 = vrot.slane %v329_v35, %v399_v39  ;;  %v414_v50 = vrot.slane %v329_v35, %v413_v43 }
 0x155   : > { %376 = vst.msk [vmem:[%s299_s6] sm:$0xff] %vm311_vm1, %v375_v40  ;;  %395 = vbcast.lane.b32.xlu1 %v393_v41, 256  ;;  %388 = vbcast.lane.b32.xlu0 %v386_v42, 256  ;;  %v455_v51 = vcombine.high %v447_v44, %v447_v44  ;;  %v463_v52 = vrot.slane %v447_v44, %v446_v37  ;;  %v764_v44 = vpop.eup %763 }
 0x156   : > { %v454_v53 = vrot.slane %v440_v45, %v446_v37  ;;  %v407_v60 = vrot.slane %v329_v35, %v406_v48  ;;  %v428_v61 = vrot.slane %v329_v35, %v427_v49  ;;  %v421_v17 = vrot.slane %v329_v35, %v420_v56 }
 0x157   : > { %v477_v57 = vrot.slane %v455_v51, %v446_v37  ;;  %v492_v58 = vrot.slane %v463_v52, %v385_v34  ;;  %v485_v59 = vcombine.high %v463_v52, %v463_v52  ;;  %v336_v45 = vmul.f32 0.6931472, %v764_v44 }
 0x158   : > { %v470_v62 = vrot.slane %v454_v53, %v446_v37  ;;  %v456_v63 = vcombine.high %v454_v53, %v454_v53 }
 0x159   : > { %402 = vbcast.lane.b32.xlu1 %v400_v47, 256  ;;  %416 = vbcast.lane.b32.xlu0 %v414_v50, 256  ;;  %v496_v0 = vrot.slane %v477_v57, %v385_v34  ;;  %v529_v1 = vsub.f32 %v882_v55, %v492_v58  ;;  %v500_v2 = vrot.slane %v485_v59, %v385_v34 }
 0x15a   : > { %v487_v4 = vcombine.high %v477_v57, %v477_v57  ;;  %v508_v5 = vrot.slane %v470_v62, %v385_v34  ;;  %v486_v7 = vcombine.high %v470_v62, %v470_v62  ;;  %v484_v8 = vrot.slane %v456_v63, %v446_v37 }
 0x15b   : > { %v530_v9 = vsub.f32 %v882_v55, %v496_v0  ;;  %v531_v10 = vsub.f32 %v882_v55, %v500_v2  ;;  %v337_v47 = vadd.f32 %v336_v45, %v862_v12 }
 0x15c   : > { %v504_v11 = vrot.slane %v487_v4, %v385_v34  ;;  %v533_v13 = vsub.f32 %v882_v55, %v508_v5  ;;  %v516_v14 = vrot.slane %v486_v7, %v385_v34  ;;  %v512_v15 = vrot.slane %v484_v8, %v385_v34 }
 0x15d   : > { %409 = vbcast.lane.b32.xlu1 %v407_v60, 256  ;;  %430 = vbcast.lane.b32.xlu0 %v428_v61, 256  ;;  %v488_v16 = vcombine.high %v484_v8, %v484_v8 }
 0x15e   : > { %v532_v18 = vsub.f32 %v882_v55, %v504_v11  ;;  %v535_v19 = vsub.f32 %v882_v55, %v516_v14  ;;  %v534_v21 = vsub.f32 %v882_v55, %v512_v15 }
 0x15f   : > { %v520_v22 = vrot.slane %v488_v16, %v385_v34 }
 0x161   : > { %423 = vbcast.lane.b32.xlu1 %v421_v17, 256  ;;  %v536_v23 = vsub.f32 %v882_v55, %v520_v22 }
 0x1b8   : > { %v356_v25 = vpop.xlane.xlu0 %355 }
 0x1b9   : > { %v357_v28 = vcvt.f32.s32 %v356_v25 }
 0x1bb   : > { %v360_v29 = vadd.s32 %v359_v27, %v357_v28 }
 0x1bd   : > { %vm361_vm5 = vcmp.eq.s32.totalorder %v858_v6, %v360_v29  ;;  %vm364_vm6 = vcmp.eq.s32.totalorder %v360_v29, 8 }
 0x1be   : > { %v728_v30 = vsel %vm361_vm5, 1.0, %v790_v54 }
 0x1bf   : > { %v365_v31 = vmul.f32 %v728_v30, %v854_v3 }
 0x1c1   : > { %v366_v32 = vsel %vm311_vm1, %v365_v31, 0.0 }
 0x1c2   : > { %367 = vadd.xlane.f32.xlu1 %v366_v32 }
 0x1c7   : > { %v396_v20 = vpop.permute.xlu1 %395  ;;  %v389_v6 = vpop.permute.xlu0 %388 }
 0x1c8   : > { %v538_v33 = vmul.f32 %v530_v9, %v396_v20  ;;  %v537_v3 = vmul.f32 %v529_v1, %v389_v6 }
 0x1ca   : > { %546 = vst.msk [vmem:[%s900_s11 + $0x8] sm:$0xff] %vm311_vm1, %v538_v33  ;;  %545 = vst.msk [vmem:[%s900_s11] sm:$0xff] %vm311_vm1, %v537_v3 }
 0x1cb   : > { %v403_v34 = vpop.permute.xlu1 %402  ;;  %v417_v35 = vpop.permute.xlu0 %416 }
 0x1cc   : > { %v539_v36 = vmul.f32 %v531_v10, %v403_v34  ;;  %v541_v37 = vmul.f32 %v533_v13, %v417_v35 }
 0x1ce   : > { %547 = vst.msk [vmem:[%s900_s11 + $0x10] sm:$0xff] %vm311_vm1, %v539_v36  ;;  %549 = vst.msk [vmem:[%s900_s11 + $0x20] sm:$0xff] %vm311_vm1, %v541_v37 }
 0x1cf   : > { %v410_v38 = vpop.permute.xlu1 %409  ;;  %v431_v39 = vpop.permute.xlu0 %430 }
 0x1d0   : > { %v540_v40 = vmul.f32 %v532_v18, %v410_v38  ;;  %v543_v41 = vmul.f32 %v535_v19, %v431_v39 }
 0x1d2   : > { %548 = vst.msk [vmem:[%s900_s11 + $0x18] sm:$0xff] %vm311_vm1, %v540_v40  ;;  %551 = vst.msk [vmem:[%s900_s11 + $0x30] sm:$0xff] %vm311_vm1, %v543_v41 }
 0x1d3   : > { %v424_v42 = vpop.permute.xlu1 %423  ;;  %437 = vbcast.lane.b32.xlu1 %v880_v46, 256 }
 0x1d4   : > { %v542_v43 = vmul.f32 %v534_v21, %v424_v42 }
 0x1d6   : > { %550 = vst.msk [vmem:[%s900_s11 + $0x28] sm:$0xff] %vm311_vm1, %v542_v43 }
 0x24b   : > { %v368_v48 = vpop.xlane.xlu1 %367 }
 0x24c   : > { %v369_v49 = vsel %vm364_vm6, 0.0, %v368_v48 }
 0x24d   : > { %v371_v50 = vsub.f32 %v337_v47, %v369_v49 }
 0x24f   : > { %373 = vst.msk [vmem:[%s295_s14] sm:$0xff] %vm372_vm7, %v371_v50  ;;  %v438_v46 = vpop.permute.xlu1 %437 }
 0x250   : > { %v544_v51 = vmul.f32 %v536_v23, %v438_v46 }
 0x252   : > { %552 = vst.msk [vmem:[%s900_s11 + $0x38] sm:$0xff] %vm311_vm1, %v544_v51 }
 0x253 PF: > { %s16_s20 = sadd.s32 1, %s787_s20   ;;  %s940_s18 = smov %s783_s19 }
 0x254   : > { %p13_p6 = scmp.ge.s32.totalorder %s16_s20, 4   ;;  %s941_s19 = smov %s943_s1 }
 0x256   :  { %15 = sbr.rel (!%p13_p6) target bundleno = 2 (0x2), region = 96 }

</bundles_post_ra>
